<compile_context>
chip_gen: v7x
topology: tpu7x:2x2x1
jax: 0.10.0
libtpu: 0.0.40
codegen_flags: <defaults>
</compile_context>

<pallas_src>
import functools
import math

import jax
import jax.numpy as jnp
from jax.experimental import pallas as pl
from jax.experimental.pallas import tpu as pltpu


def _temporal_transformer_kernel(x_ref, wqkv_ref, bqkv_ref, wo_ref, bo_ref,
                                 g_ref, beta_ref, o_ref, *, bb, T, E, mxu_dtype):
    # One grid step == `bb` batch elements.  Row-flatten them so LayerNorm and the
    # projections run as one (bb*T, E) pass (more rows per vreg / MXU push).
    x = x_ref[...].reshape(bb * T, E).astype(jnp.float32)            # (R, E)

    # --- LayerNorm over last dim (eps = 1e-5, affine), fp32 VPU math ---
    mean = jnp.mean(x, axis=-1, keepdims=True)
    xc = x - mean
    var = jnp.mean(xc * xc, axis=-1, keepdims=True)
    x1 = xc * jax.lax.rsqrt(var + 1e-5)
    x1 = x1 * g_ref[...] + beta_ref[...]                             # (1, E) broadcast over rows

    # --- fused Q/K/V projection: one (R,E) @ (E,3E) matmul ---
    # Weights arrive pre-transposed (in,out), pre-cast to the MXU dtype, with the 1/sqrt(E)
    # attention scale folded into the Q columns and Q bias -> no in-kernel transpose, no
    # per-step weight cast, no scale multiply.
    qkv = jnp.dot(x1.astype(mxu_dtype), wqkv_ref[...],
                  preferred_element_type=jnp.float32) + bqkv_ref[...]
    q = qkv[:, 0 * E:1 * E].reshape(bb, T, E)
    k = qkv[:, 1 * E:2 * E].reshape(bb, T, E)
    v = qkv[:, 2 * E:3 * E].reshape(bb, T, E)

    # --- scaled dot-product attention (batched over the bb batch elements in this block) ---
    s = jnp.einsum("bqd,bkd->bqk", q.astype(mxu_dtype), k.astype(mxu_dtype),
                   preferred_element_type=jnp.float32)               # (bb, T, T)
    s = s - jnp.max(s, axis=-1, keepdims=True)
    p = jnp.exp(s)
    # Exact normalisation (plain divide): approx reciprocal saved nothing here (EUP not binding)
    # and was the only reason the fp32 tolerance had to be loosened.
    p = p / jnp.sum(p, axis=-1, keepdims=True)
    attn = jnp.einsum("bqk,bkd->bqd", p.astype(mxu_dtype), v.astype(mxu_dtype),
                      preferred_element_type=jnp.float32)            # (bb, T, E)

    # --- output projection + residual (residual added in fp32) ---
    out = jnp.dot(attn.reshape(bb * T, E).astype(mxu_dtype), wo_ref[...],
                  preferred_element_type=jnp.float32) + bo_ref[...]
    o_ref[...] = (out + x).reshape(bb, T, E).astype(o_ref.dtype)


def _tensorcores_per_chip():
    """v7x exposes 2 TensorCores per chip; v5e/v6e (and anything unknown) get 1."""
    try:
        kind = jax.devices()[0].device_kind.lower()
    except Exception:
        return 1
    return 2 if ("v7" in kind or "7x" in kind) else 1


def temporal_transformer(x, params, *, mxu_dtype=jnp.bfloat16):
    """x: (B, T, E) float32. params: dict from init_params (PyTorch Linear (out,in) layout).

    mxu_dtype controls only the matmul operand dtype (bf16 default = native MXU path on
    v5e/v6e/v7x); LayerNorm / softmax / residual math stays fp32.  Pass jnp.float32 for a
    full-precision check.
    """
    B, T, E = x.shape

    # Generation-aware chunking: split the batch across 2 grid steps ONLY where a second
    # TensorCore exists (v7x).  On single-TC chips the split is just serial-loop overhead.
    n_chunks = 2 if (_tensorcores_per_chip() == 2 and B > 1) else 1
    x_in, Bp = x, B
    if n_chunks == 2 and B % 2 != 0:
        Bp = B + 1                                                   # pad one row so both TCs work
        x_in = jnp.pad(x, ((0, 1), (0, 0), (0, 0)))
    bb = Bp // n_chunks

    # One-time layout plumbing, hoisted out of the kernel:
    #   * transpose PyTorch (out,in) weights to (in,out) so the kernel does plain x @ W
    #   * fuse [Q|K|V] into one (E, 3E) matrix and one (1, 3E) bias
    #   * fold the 1/sqrt(E) attention scale into the Q weights and bias
    #   * cast matmul weights to the MXU dtype here (half the weight DMA/VMEM, no per-step cast);
    #     biases stay fp32 since they are added to the fp32 accumulator.
    scale = math.sqrt(1.0 / float(E))
    w_qkv = jnp.concatenate(
        [params["wq"].T * scale, params["wk"].T, params["wv"].T], axis=1).astype(mxu_dtype)
    b_qkv = jnp.concatenate(
        [params["bq"] * scale, params["bk"], params["bv"]], axis=1)          # (1, 3E) fp32
    w_out = params["wo"].T.astype(mxu_dtype)                                 # (E, E)
    b_out = params["bo"]                                                     # (1, E)  fp32
    g, beta = params["ln_w"], params["ln_b"]

    x_spec = pl.BlockSpec((bb, T, E), lambda i: (i, 0, 0))
    # Grid-invariant weights: constant index_map -> fetched once, kept resident across steps.
    wqkv_spec = pl.BlockSpec((E, 3 * E), lambda i: (0, 0))
    bqkv_spec = pl.BlockSpec((1, 3 * E), lambda i: (0, 0))
    wo_spec = pl.BlockSpec((E, E), lambda i: (0, 0))
    vec_spec = pl.BlockSpec((1, E), lambda i: (0, 0))

    kernel = functools.partial(_temporal_transformer_kernel,
                               bb=bb, T=T, E=E, mxu_dtype=mxu_dtype)

    out = pl.pallas_call(
        kernel,
        out_shape=jax.ShapeDtypeStruct((Bp, T, E), x.dtype),
        grid_spec=pltpu.PrefetchScalarGridSpec(
            num_scalar_prefetch=0,
            grid=(n_chunks,),
            in_specs=[x_spec,
                      wqkv_spec, bqkv_spec,   # fused QKV weight / bias
                      wo_spec, vec_spec,      # output projection weight / bias
                      vec_spec, vec_spec],    # layernorm gamma / beta
            out_specs=x_spec,
        ),
        compiler_params=pltpu.CompilerParams(
            dimension_semantics=("parallel",)),
    )(x_in, w_qkv, b_qkv, w_out, b_out, g, beta)
    return out[:B] if Bp != B else out


def init_params(key, emb_dim):
    """Deterministic synthetic parameters with PyTorch Linear weight layout (out, in)."""
    ks = jax.random.split(key, 8)
    lim = 1.0 / math.sqrt(emb_dim)

    def lin(kw, kb):
        w = jax.random.uniform(kw, (emb_dim, emb_dim), jnp.float32, -lim, lim)
        b = jax.random.uniform(kb, (1, emb_dim), jnp.float32, -lim, lim)
        return w, b

    wq, bq = lin(ks[0], ks[1])
    wk, bk = lin(ks[2], ks[3])
    wv, bv = lin(ks[4], ks[5])
    wo, bo = lin(ks[6], ks[7])
    ln_w = jnp.ones((1, emb_dim), jnp.float32)   # nn.LayerNorm default init
    ln_b = jnp.zeros((1, emb_dim), jnp.float32)
    return dict(wq=wq, bq=bq, wk=wk, bk=bk, wv=wv, bv=bv, wo=wo, bo=bo,
                ln_w=ln_w, ln_b=ln_b)


def reference(x, p):
    """Plain-JAX reference mirroring the PyTorch forward (full-precision matmuls)."""
    E = x.shape[-1]
    with jax.default_matmul_precision("highest"):
        mean = jnp.mean(x, axis=-1, keepdims=True)
        var = jnp.mean((x - mean) ** 2, axis=-1, keepdims=True)
        x1 = (x - mean) / jnp.sqrt(var + 1e-5) * p["ln_w"] + p["ln_b"]
        q = x1 @ p["wq"].T + p["bq"]
        k = x1 @ p["wk"].T + p["bk"]
        v = x1 @ p["wv"].T + p["bv"]
        s = (q * math.sqrt(1.0 / float(E))) @ jnp.swapaxes(k, -2, -1)
        w = jax.nn.softmax(s, axis=-1)
        out = (w @ v) @ p["wo"].T + p["bo"]
        return out + x


if __name__ == "__main__":
    B, T, E = 2, 8, 32   # small shapes: batch=2, frames=8, emb_dim=32
    key = jax.random.PRNGKey(0)
    kx, kp = jax.random.split(key)
    x = jax.random.normal(kx, (B, T, E), jnp.float32)
    params = init_params(kp, E)
    ref = reference(x, params)

    # Default (perf) path: bf16 MXU operands, fp32 VPU math.
    out_bf16 = temporal_transformer(x, params)                       # mxu_dtype=bf16 default
    jax.block_until_ready(out_bf16)
    assert out_bf16.shape == (B, T, E)
    assert jnp.allclose(out_bf16, ref, atol=5e-2, rtol=5e-2), "bf16-MXU path mismatch vs reference"

    # Full-precision path: exact softmax divide restored -> tight tolerance again.
    out_f32 = temporal_transformer(x, params, mxu_dtype=jnp.float32)
    jax.block_until_ready(out_f32)
    assert jnp.allclose(out_f32, ref, atol=5e-4, rtol=1e-4), "fp32 path mismatch vs reference"

    print("KERNEL_OK")
</pallas_src>

<mosaic_0001>
module attributes {stable_mosaic.version = 11 : i64} {
  func.func @_temporal_transformer_kernel(%arg0: i32, %arg1: memref<2x8x32xf32, #tpu.memory_space<vmem>>, %arg2: memref<32x96xbf16, #tpu.memory_space<vmem>>, %arg3: memref<1x96xf32, #tpu.memory_space<vmem>>, %arg4: memref<32x32xbf16, #tpu.memory_space<vmem>>, %arg5: memref<1x32xf32, #tpu.memory_space<vmem>>, %arg6: memref<1x32xf32, #tpu.memory_space<vmem>>, %arg7: memref<1x32xf32, #tpu.memory_space<vmem>>, %arg8: memref<2x8x32xf32, #tpu.memory_space<vmem>>) attributes {dimension_semantics = [#tpu.dimension_semantics<parallel>], iteration_bounds = array<i64: 1>, scalar_prefetch = 0 : i64, scratch_operands = 0 : i64, tpu.core_type = #tpu.core_type<tc>, window_params = [{transform_indices = @transform_0, window_bounds = array<i64: 2, 8, 32>}, {pipeline_mode = #tpu.pipeline_mode<synchronous>, transform_indices = @transform_1, window_bounds = array<i64: 32, 96>}, {pipeline_mode = #tpu.pipeline_mode<synchronous>, transform_indices = @transform_2, window_bounds = array<i64: 1, 96>}, {pipeline_mode = #tpu.pipeline_mode<synchronous>, transform_indices = @transform_3, window_bounds = array<i64: 32, 32>}, {pipeline_mode = #tpu.pipeline_mode<synchronous>, transform_indices = @transform_4, window_bounds = array<i64: 1, 32>}, {pipeline_mode = #tpu.pipeline_mode<synchronous>, transform_indices = @transform_5, window_bounds = array<i64: 1, 32>}, {pipeline_mode = #tpu.pipeline_mode<synchronous>, transform_indices = @transform_6, window_bounds = array<i64: 1, 32>}, {transform_indices = @transform_7, window_bounds = array<i64: 2, 8, 32>}]} {
    %c0 = arith.constant 0 : index
    %c0_0 = arith.constant 0 : index
    %c0_1 = arith.constant 0 : index
    %0 = vector.load %arg1[%c0, %c0_0, %c0_1] : memref<2x8x32xf32, #tpu.memory_space<vmem>>, vector<2x8x32xf32>
    %1 = vector.shape_cast %0 : vector<2x8x32xf32> to vector<16x32xf32>
    %cst = arith.constant dense<0.000000e+00> : vector<16xf32>
    %2 = vector.multi_reduction <add>, %1, %cst [1] : vector<16x32xf32> to vector<16xf32>
    %3 = vector.shape_cast %2 : vector<16xf32> to vector<16x1xf32>
    %cst_2 = arith.constant 3.200000e+01 : f32
    %4 = vector.broadcast %cst_2 : f32 to vector<16x1xf32>
    %5 = arith.divf %3, %4 : vector<16x1xf32>
    %6 = vector.broadcast %5 : vector<16x1xf32> to vector<16x32xf32>
    %7 = arith.subf %1, %6 : vector<16x32xf32>
    %8 = arith.mulf %7, %7 : vector<16x32xf32>
    %cst_3 = arith.constant dense<0.000000e+00> : vector<16xf32>
    %9 = vector.multi_reduction <add>, %8, %cst_3 [1] : vector<16x32xf32> to vector<16xf32>
    %10 = vector.shape_cast %9 : vector<16xf32> to vector<16x1xf32>
    %cst_4 = arith.constant 3.200000e+01 : f32
    %11 = vector.broadcast %cst_4 : f32 to vector<16x1xf32>
    %12 = arith.divf %10, %11 : vector<16x1xf32>
    %cst_5 = arith.constant 9.99999974E-6 : f32
    %13 = vector.broadcast %cst_5 : f32 to vector<16x1xf32>
    %14 = arith.addf %12, %13 : vector<16x1xf32>
    %15 = math.rsqrt %14 : vector<16x1xf32>
    %16 = vector.broadcast %15 : vector<16x1xf32> to vector<16x32xf32>
    %17 = arith.mulf %7, %16 : vector<16x32xf32>
    %c0_6 = arith.constant 0 : index
    %c0_7 = arith.constant 0 : index
    %18 = vector.load %arg6[%c0_6, %c0_7] : memref<1x32xf32, #tpu.memory_space<vmem>>, vector<1x32xf32>
    %19 = vector.broadcast %18 : vector<1x32xf32> to vector<16x32xf32>
    %20 = arith.mulf %17, %19 : vector<16x32xf32>
    %c0_8 = arith.constant 0 : index
    %c0_9 = arith.constant 0 : index
    %21 = vector.load %arg7[%c0_8, %c0_9] : memref<1x32xf32, #tpu.memory_space<vmem>>, vector<1x32xf32>
    %22 = vector.broadcast %21 : vector<1x32xf32> to vector<16x32xf32>
    %23 = arith.addf %20, %22 : vector<16x32xf32>
    %24 = arith.truncf %23 : vector<16x32xf32> to vector<16x32xbf16>
    %c0_10 = arith.constant 0 : index
    %c0_11 = arith.constant 0 : index
    %25 = vector.load %arg2[%c0_10, %c0_11] : memref<32x96xbf16, #tpu.memory_space<vmem>>, vector<32x96xbf16>
    %cst_12 = arith.constant dense<0.000000e+00> : vector<16x96xf32>
    %26 = tpu.matmul %24, %25, %cst_12 {dimension_numbers = #tpu.dot_dimension_numbers<[1], [0], [0], [1], [0, 0, 1, 1], [], []>} : vector<16x32xbf16>, vector<32x96xbf16>, vector<16x96xf32> -> vector<16x96xf32>
    %c0_13 = arith.constant 0 : index
    %c0_14 = arith.constant 0 : index
    %27 = vector.load %arg3[%c0_13, %c0_14] : memref<1x96xf32, #tpu.memory_space<vmem>>, vector<1x96xf32>
    %28 = vector.broadcast %27 : vector<1x96xf32> to vector<16x96xf32>
    %29 = arith.addf %26, %28 : vector<16x96xf32>
    %30 = vector.extract_strided_slice %29 {offsets = [0, 0], sizes = [16, 32], strides = [1, 1]} : vector<16x96xf32> to vector<16x32xf32>
    %31 = vector.shape_cast %30 : vector<16x32xf32> to vector<2x8x32xf32>
    %32 = vector.extract_strided_slice %29 {offsets = [0, 32], sizes = [16, 32], strides = [1, 1]} : vector<16x96xf32> to vector<16x32xf32>
    %33 = vector.shape_cast %32 : vector<16x32xf32> to vector<2x8x32xf32>
    %34 = vector.extract_strided_slice %29 {offsets = [0, 64], sizes = [16, 32], strides = [1, 1]} : vector<16x96xf32> to vector<16x32xf32>
    %35 = vector.shape_cast %34 : vector<16x32xf32> to vector<2x8x32xf32>
    %36 = arith.truncf %31 : vector<2x8x32xf32> to vector<2x8x32xbf16>
    %37 = arith.truncf %33 : vector<2x8x32xf32> to vector<2x8x32xbf16>
    "tpu.trace_start"() <{level = 10 : i32, message = "bqd,bkd->bqk"}> : () -> ()
    %cst_15 = arith.constant dense<0.000000e+00> : vector<2x8x8xf32>
    %38 = tpu.matmul %36, %37, %cst_15 {dimension_numbers = #tpu.dot_dimension_numbers<[2], [2], [1], [1], [0, 0, 0, 1, 1, 1], [0], [0]>} : vector<2x8x32xbf16>, vector<2x8x32xbf16>, vector<2x8x8xf32> -> vector<2x8x8xf32>
    "tpu.trace_stop"() : () -> ()
    %cst_16 = arith.constant dense<0xFF800000> : vector<2x8xf32>
    %39 = vector.multi_reduction <maximumf>, %38, %cst_16 [2] : vector<2x8x8xf32> to vector<2x8xf32>
    %40 = vector.shape_cast %39 : vector<2x8xf32> to vector<2x8x1xf32>
    %41 = vector.broadcast %40 : vector<2x8x1xf32> to vector<2x8x8xf32>
    %42 = arith.subf %38, %41 : vector<2x8x8xf32>
    %43 = math.exp %42 : vector<2x8x8xf32>
    %cst_17 = arith.constant dense<0.000000e+00> : vector<2x8xf32>
    %44 = vector.multi_reduction <add>, %43, %cst_17 [2] : vector<2x8x8xf32> to vector<2x8xf32>
    %45 = vector.shape_cast %44 : vector<2x8xf32> to vector<2x8x1xf32>
    %46 = vector.broadcast %45 : vector<2x8x1xf32> to vector<2x8x8xf32>
    %47 = arith.divf %43, %46 : vector<2x8x8xf32>
    %48 = arith.truncf %47 : vector<2x8x8xf32> to vector<2x8x8xbf16>
    %49 = arith.truncf %35 : vector<2x8x32xf32> to vector<2x8x32xbf16>
    "tpu.trace_start"() <{level = 10 : i32, message = "bqk,bkd->bqd"}> : () -> ()
    %cst_18 = arith.constant dense<0.000000e+00> : vector<2x8x32xf32>
    %50 = tpu.matmul %48, %49, %cst_18 {dimension_numbers = #tpu.dot_dimension_numbers<[2], [1], [1], [2], [0, 0, 0, 1, 1, 2], [0], [0]>} : vector<2x8x8xbf16>, vector<2x8x32xbf16>, vector<2x8x32xf32> -> vector<2x8x32xf32>
    "tpu.trace_stop"() : () -> ()
    %51 = vector.shape_cast %50 : vector<2x8x32xf32> to vector<16x32xf32>
    %52 = arith.truncf %51 : vector<16x32xf32> to vector<16x32xbf16>
    %c0_19 = arith.constant 0 : index
    %c0_20 = arith.constant 0 : index
    %53 = vector.load %arg4[%c0_19, %c0_20] : memref<32x32xbf16, #tpu.memory_space<vmem>>, vector<32x32xbf16>
    %cst_21 = arith.constant dense<0.000000e+00> : vector<16x32xf32>
    %54 = tpu.matmul %52, %53, %cst_21 {dimension_numbers = #tpu.dot_dimension_numbers<[1], [0], [0], [1], [0, 0, 1, 1], [], []>} : vector<16x32xbf16>, vector<32x32xbf16>, vector<16x32xf32> -> vector<16x32xf32>
    %c0_22 = arith.constant 0 : index
    %c0_23 = arith.constant 0 : index
    %55 = vector.load %arg5[%c0_22, %c0_23] : memref<1x32xf32, #tpu.memory_space<vmem>>, vector<1x32xf32>
    %56 = vector.broadcast %55 : vector<1x32xf32> to vector<16x32xf32>
    %57 = arith.addf %54, %56 : vector<16x32xf32>
    %58 = arith.addf %57, %1 : vector<16x32xf32>
    %59 = vector.shape_cast %58 : vector<16x32xf32> to vector<2x8x32xf32>
    %c0_24 = arith.constant 0 : index
    %c0_25 = arith.constant 0 : index
    %c0_26 = arith.constant 0 : index
    %60 = vector.load %arg8[%c0_24, %c0_25, %c0_26] : memref<2x8x32xf32, #tpu.memory_space<vmem>>, vector<2x8x32xf32>
    tpu.vector_store %arg8[%c0_24, %c0_25, %c0_26], %59 {strides = array<i32>} : memref<2x8x32xf32, #tpu.memory_space<vmem>>, vector<2x8x32xf32>,
    return
  }
  func.func @transform_0(%arg0: i32) -> (i32, i32, i32) {
    %c0_i32 = arith.constant 0 : i32
    %c0_i32_0 = arith.constant 0 : i32
    %c0_i32_1 = arith.constant 0 : i32
    return %arg0, %c0_i32, %c0_i32_0 : i32, i32, i32
  }
  func.func @transform_1(%arg0: i32) -> (i32, i32) {
    %c0_i32 = arith.constant 0 : i32
    %c0_i32_0 = arith.constant 0 : i32
    %c0_i32_1 = arith.constant 0 : i32
    return %c0_i32, %c0_i32_0 : i32, i32
  }
  func.func @transform_2(%arg0: i32) -> (i32, i32) {
    %c0_i32 = arith.constant 0 : i32
    %c0_i32_0 = arith.constant 0 : i32
    %c0_i32_1 = arith.constant 0 : i32
    return %c0_i32, %c0_i32_0 : i32, i32
  }
  func.func @transform_3(%arg0: i32) -> (i32, i32) {
    %c0_i32 = arith.constant 0 : i32
    %c0_i32_0 = arith.constant 0 : i32
    %c0_i32_1 = arith.constant 0 : i32
    return %c0_i32, %c0_i32_0 : i32, i32
  }
  func.func @transform_4(%arg0: i32) -> (i32, i32) {
    %c0_i32 = arith.constant 0 : i32
    %c0_i32_0 = arith.constant 0 : i32
    %c0_i32_1 = arith.constant 0 : i32
    return %c0_i32, %c0_i32_0 : i32, i32
  }
  func.func @transform_5(%arg0: i32) -> (i32, i32) {
    %c0_i32 = arith.constant 0 : i32
    %c0_i32_0 = arith.constant 0 : i32
    %c0_i32_1 = arith.constant 0 : i32
    return %c0_i32, %c0_i32_0 : i32, i32
  }
  func.func @transform_6(%arg0: i32) -> (i32, i32) {
    %c0_i32 = arith.constant 0 : i32
    %c0_i32_0 = arith.constant 0 : i32
    %c0_i32_1 = arith.constant 0 : i32
    return %c0_i32, %c0_i32_0 : i32, i32
  }
  func.func @transform_7(%arg0: i32) -> (i32, i32, i32) {
    %c0_i32 = arith.constant 0 : i32
    %c0_i32_0 = arith.constant 0 : i32
    %c0_i32_1 = arith.constant 0 : i32
    return %arg0, %c0_i32, %c0_i32_0 : i32, i32, i32
  }
}

</mosaic_0001>

<bundles_post_ra>
// kernel: tpu_custom_call.1
= control target key start
LH: loop header
LB: loop body
LE: loop exit
PB: predicated region body
PF: predicated region fallthrough
CT: control target
= control target key end

     0   :  { %12 = vsyncpa [#allocation3], 0  ;;  %s859_s0 = inlined_call_operand.hbm [shape: f32[2,8,32], index: 0, kind: input, shape index: {}]   ;;  %s860_s1 = inlined_call_operand.hbm [shape: bf16[32,96], index: 1, kind: input, shape index: {}]   ;;  %s861_s2 = inlined_call_operand.vmem [shape: f32[1,96], index: 2, kind: input, shape index: {}]   ;;  %s862_s3 = inlined_call_operand.hbm [shape: bf16[32,32], index: 3, kind: input, shape index: {}]   ;;  %s863_s4 = inlined_call_operand.vmem [shape: f32[1,32], index: 4, kind: input, shape index: {}]   ;;  %s864_s5 = inlined_call_operand.vmem [shape: f32[1,32], index: 5, kind: input, shape index: {}]   ;;  %s865_s6 = inlined_call_operand.vmem [shape: f32[1,32], index: 6, kind: input, shape index: {}]   ;;  %s866_s7 = inlined_call_operand.hbm [shape: f32[2,8,32], index: 7, kind: output, shape index: {}]  }
   0x1   :  { %13 = vsyncpa [#allocation6], 0 }
   0x2   :  { %14 = vsyncpa [#allocation4], 0  ;;  %s686_s24 = smov [#allocation5]   ;;  %s592_s28 = scalar_lea.hbm %s860_s1, 256 }
   0x3   :  { %s32_s25 = sshll.u32 %s686_s24, 4  ;;  %p593_p0 = scmp.ne.s32.totalorder %s860_s1, %s592_s28  ;;  %s33_s25 = int_to_ptr.vmem [resolvable:$true] %s32_s25 }
   0x4   :  { %p596_p1 = scmp.lt.u32.totalorder %s592_s28, %s860_s1 }
   0x6   :  { %p598_p2 = pnand %p596_p1, %p593_p0 }
   0x8   :  { %601 = shalt.err (!%p598_p2)
}
   0x9   :  { %s602_s10 = scalar_lea.vmem %s33_s25, 256  ;;  %p607_p4 = scmp.lt.s32.totalorder %s33_s25, %s33_s25 }
   0xa   :  { %p603_p3 = scmp.ne.s32.totalorder %s33_s25, %s602_s10  ;;  %p608_p5 = scmp.lt.s32.totalorder %s602_s10, %s602_s10 }
   0xc   :  { %p609_p6 = por %p608_p5, %p607_p4 }
   0xe   :  { %p610_p7 = pnand %p609_p6, %p603_p3 }
  0x10   :  { %613 = shalt.err (!%p610_p7)
}
  0x11   :  { %s687_s11 = smov 64   ;;  %s688_s12 = smov 4  }
  0x12   :  { %38 = dma.hbm_to_vmem [thread:$0]  %s860_s1, 256, %s33_s25, [#allocation6], %s687_s11, %s687_s11, %s688_s12  }
  0x13   :  { %s689_s15 = smov [#allocation2]   ;;  %s614_s19 = scalar_lea.hbm %s859_s0, 256 }
  0x14   :  { %s20_s16 = sshll.u32 %s689_s15, 4  ;;  %p615_p8 = scmp.ne.s32.totalorder %s859_s0, %s614_s19  ;;  %s21_s16 = int_to_ptr.vmem [resolvable:$true] %s20_s16 }
  0x15   :  { %p618_p9 = scmp.lt.u32.totalorder %s614_s19, %s859_s0 }
  0x17   :  { %p620_p10 = pnand %p618_p9, %p615_p8 }
  0x19   :  { %623 = shalt.err (!%p620_p10)
}
  0x1a   :  { %s624_s24 = scalar_lea.vmem %s21_s16, 256  ;;  %p629_p12 = scmp.lt.s32.totalorder %s21_s16, %s21_s16 }
  0x1b   :  { %p625_p11 = scmp.ne.s32.totalorder %s21_s16, %s624_s24  ;;  %p630_p13 = scmp.lt.s32.totalorder %s624_s24, %s624_s24 }
  0x1d   :  { %p631_p0 = por %p630_p13, %p629_p12 }
  0x1f   :  { %p632_p1 = pnand %p631_p0, %p625_p11 }
  0x21   :  { %635 = shalt.err (!%p632_p1)
}
  0x22   :  { %s690_s1 = smov 128   ;;  %s691_s25 = smov 8  }
  0x23   :  { %26 = dma.hbm_to_vmem [thread:$0]  %s859_s0, 256, %s21_s16, [#allocation3], %s690_s1, %s690_s1, %s691_s25  }
  0x24   :  { %s692_s28 = smov [#allocation7]   ;;  %s636_s9 = scalar_lea.hbm %s862_s3, 256 }
  0x25   :  { %s46_s29 = sshll.u32 %s692_s28, 4  ;;  %p637_p2 = scmp.ne.s32.totalorder %s862_s3, %s636_s9  ;;  %s47_s29 = int_to_ptr.vmem [resolvable:$true] %s46_s29 }
  0x26   :  { %p640_p3 = scmp.lt.u32.totalorder %s636_s9, %s862_s3 }
  0x28   :  { %p642_p4 = pnand %p640_p3, %p637_p2 }
  0x2a   :  { %645 = shalt.err (!%p642_p4)
}
  0x2b   :  { %s646_s17 = scalar_lea.vmem %s47_s29, 256  ;;  %p651_p6 = scmp.lt.s32.totalorder %s47_s29, %s47_s29 }
  0x2c   :  { %p647_p5 = scmp.ne.s32.totalorder %s47_s29, %s646_s17  ;;  %p652_p7 = scmp.lt.s32.totalorder %s646_s17, %s646_s17 }
  0x2e   :  { %p653_p8 = por %p652_p7, %p651_p6 }
  0x30   :  { %p654_p9 = pnand %p653_p8, %p647_p5 }
  0x32   :  { %657 = shalt.err (!%p654_p9)
}
  0x33   :  { %52 = dma.hbm_to_vmem [thread:$0]  %s862_s3, 256, %s47_s29, [#allocation6], %s687_s11, %s687_s11, %s688_s12  }
  0x34   :  { %680 = dma.done.wait [#allocation3], 256  }
  0x35   :  { %681 = vsyncadd [#allocation3], 4294967040 }
  0x36   :  { %682 = dma.done.wait [#allocation6], 512  }
  0x37   :  { %683 = vsyncadd [#allocation6], 4294966784  ;;  %vm71_vm0 = vcmask 261120   ;;  %v782_v0 = vld [vmem:[#allocation2] sm:$0xff]  ;;  %v784_v1 = vld [vmem:[#allocation2 + $0x8] sm:$0xff]  ;;  %v693_v15 = vmov 0.0  }
  0x38   :  { %v72_v2 = vsel %vm71_vm0, %v782_v0, 0.0  ;;  %v75_v3 = vsel %vm71_vm0, %v784_v1, 0.0  ;;  %v576_v14 = vld [vmem:[#allocation5] sm:$0xff]   ;;  %525 = vmatprep.subr.bf16.mxu0 %v693_v15  ;;  %533 = vmatprep.subr.bf16.mxu1 %v693_v15  ;;  %v577_v16 = vld [vmem:[#allocation5 + $0x8] sm:$0xff]   ;;  %vm694_vm1 = vmmov 0   ;;  %vm285_vm2 = vcmask 64512  }
  0x39   :  { %73 = vadd.xlane.f32.xlu0 %v72_v2  ;;  %526 = vmatpush3.bf16.msra.mxu0 %v576_v14  ;;  %v497_v25 = vld [vmem:[%s864_s5] ss:$0 sm:$0xff]  ;;  %s695_s5 = smov 96   ;;  %vm315_vm3 = vcmask 1043456  }
  0x3a   :  { %529 = vmatprep.mubr.msk.bf16.mxu0 %vm694_vm1, %v693_v15  ;;  %527 = vmatprep.subr.bf16.mxu0 %v693_v15  ;;  %v498_v29 = vld [vmem:[%s865_s6] ss:$0 sm:$0xff] }
  0x3b   :  { %535 = vmatprep.mubr.msk.bf16.mxu1 %vm694_vm1, %v693_v15  ;;  %v499_v34 = vld [vmem:[%s861_s2] ss:$0 sm:$0xff] }
  0x3c   :  { %v578_v14 = vld [vmem:[#allocation7] sm:$0xff]  }
  0x3d   :  { %76 = vadd.xlane.f32.xlu0 %v75_v3  ;;  %528 = vmatpush3.bf16.msra.mxu0 %v577_v16 }
  0x3e   :  { %539 = vmatprep.subr.bf16.mxu0 %v693_v15 }
  0xc6   :  { %v74_v4 = vpop.xlane.xlu0 %73 }
  0xc7   :  { %v79_v5 = vmul.f32 0.03125, %v74_v4 }
  0xc9   :  { %v81_v6 = vsub.f32 %v782_v0, %v79_v5 }
  0xca   :  { %v77_v7 = vpop.xlane.xlu0 %76 }
  0xcb   :  { %v80_v8 = vmul.f32 0.03125, %v77_v7  ;;  %v83_v9 = vmul.f32 %v81_v6, %v81_v6 }
  0xcd   :  { %v82_v10 = vsub.f32 %v784_v1, %v80_v8  ;;  %v85_v11 = vsel %vm71_vm0, %v83_v9, 0.0 }
  0xce   :  { %86 = vadd.xlane.f32.xlu1 %v85_v11 }
  0xcf   :  { %v84_v12 = vmul.f32 %v82_v10, %v82_v10 }
  0xd1   :  { %v88_v13 = vsel %vm71_vm0, %v84_v12, 0.0 }
  0xd2   :  { %89 = vadd.xlane.f32.xlu1 %v88_v13 }
 0x15b   :  { %v87_v17 = vpop.xlane.xlu1 %86 }
 0x15c   :  { %v91_v18 = vmul.f32 0.03125, %v87_v17 }
 0x15e   :  { %v93_v19 = vadd.f32 1e-05, %v91_v18 }
 0x15f   :  { %v90_v20 = vpop.xlane.xlu1 %89 }
 0x160   :  { %580 = vrsqrt.f32 %v93_v19  ;;  %v92_v21 = vmul.f32 0.03125, %v90_v20  ;;  %v579_v19 = vld [vmem:[#allocation7 + $0x8] sm:$0xff]  }
 0x162   :  { %v94_v22 = vadd.f32 1e-05, %v92_v21 }
 0x164   :  { %582 = vrsqrt.f32 %v94_v22 }
 0x16a   :  { %v581_v23 = vpop.eup %580 }
 0x16b   :  { %v97_v24 = vmul.f32 %v581_v23, %v81_v6 }
 0x16d   :  { %v106_v28 = vmul.f32 %v497_v25, %v97_v24 }
 0x16e   :  { %v583_v26 = vpop.eup %582 }
 0x16f   :  { %v98_v27 = vmul.f32 %v583_v26, %v82_v10  ;;  %v115_v31 = vadd.f32 %v498_v29, %v106_v28 }
 0x171   :  { %v107_v30 = vmul.f32 %v497_v25, %v98_v27 }
 0x173   :  { %v116_v32 = vadd.f32 %v498_v29, %v107_v30  ;;  %v507_v29 = vld [vmem:[%s863_s4] ss:$0 sm:$0xff] }
 0x175   :  { %v117_v33 = vpack.c.bf16 %v116_v32, %v115_v31 }
 0x177   :  { %530 = vmatmul.mubr.msk.bf16.vlgmr.msra.gmra.mrb[0].mxu0 %vm71_vm0, %v117_v33 }
 0x178   :  { %541 = vmatprep.mubr.msk.bf16.mxu0 %vm694_vm1, %v693_v15 }
 0x24a   :  { %v178_v35 = vpop.f32.mrb[0].mxu0 }
 0x24b   :  { %v179_v36 = vadd.f32 %v499_v34, %v178_v35  ;;  %v531_v37 = vpop.f32.mrb[1].mxu0 }
 0x24c   :  { %v181_v38 = vpop.f32.mrb[2].mxu0 }
 0x24d   :  { %v185_v39 = vpack.c.bf16 %v179_v36, %v179_v36  ;;  %v182_v40 = vadd.f32 %v499_v34, %v181_v38  ;;  %v532_v41 = vpop.f32.mrb[3].mxu0 }
 0x24f   :  { %v186_v42 = vpack.c.bf16 %v182_v40, %v182_v40  ;;  %188 = vrot.lane.b32.xlu0 %v185_v39, %s695_s5 }
 0x251   :  { %237 = vrot.lane.b32.xlu1 %v186_v42, %s695_s5 }
 0x2c1   :  { %v189_v43 = vpop.permute.xlu0 %188 }
 0x2c2   :  { %v194_v44 = vsel %vm71_vm0, %v189_v43, 0 }
 0x2c3   :  { %534 = vmatpush3.bf16.xpose.msra.mxu1 %v194_v44  ;;  %v238_v45 = vpop.permute.xlu1 %237 }
 0x2c4   :  { %v243_v46 = vsel %vm71_vm0, %v238_v45, 0  ;;  %545 = vmatprep.subr.bf16.mxu1 %v693_v15 }
 0x2c5   :  { %540 = vmatpush3.bf16.xpose.msra.mxu0 %v243_v46 }
 0x2c6   :  { %551 = vmatprep.subr.bf16.mxu0 %v693_v15 }
 0x2ca   :  { %536 = vmatmul.mubr.msk.bf16.vlgmr.msra.gmra.mrb[0].mxu1 %vm71_vm0, %v185_v39 }
 0x2cb   :  { %547 = vmatprep.mubr.msk.bf16.mxu1 %vm694_vm1, %v693_v15 }
 0x2cc   :  { %542 = vmatmul.mubr.msk.bf16.vlgmr.msra.gmra.mrb[4].mxu0 %vm71_vm0, %v186_v42 }
 0x2cd   :  { %553 = vmatprep.mubr.msk.bf16.mxu0 %vm694_vm1, %v693_v15 }
 0x39d   :  { %v230_v47 = vpop.f32.mrb[0].mxu1 }
 0x39e   :  { %v537_v48 = vpop.f32.mrb[1].mxu1  ;;  %v286_v49 = vsel %vm285_vm2, %v230_v47, -inf }
 0x39f   :  { %v233_v50 = vpop.f32.mrb[2].mxu1  ;;  %287 = vmax.xlane.f32.xlu1 %v286_v49  ;;  %v279_v51 = vpop.f32.mrb[4].mxu0 }
 0x3a0   :  { %v538_v52 = vpop.f32.mrb[3].mxu1  ;;  %v543_v53 = vpop.f32.mrb[5].mxu0  ;;  %v289_v54 = vsel %vm285_vm2, %v279_v51, -inf }
 0x3a1   :  { %290 = vmax.xlane.f32.xlu0 %v289_v54  ;;  %v282_v55 = vpop.f32.mrb[6].mxu0 }
 0x3a2   :  { %v544_v56 = vpop.f32.mrb[7].mxu0 }
 0x42c   :  { %v288_v57 = vpop.xlane.xlu1 %287 }
 0x42d   :  { %v292_v58 = vsub.f32 %v230_v47, %v288_v57 }
 0x42e   :  { %v291_v59 = vpop.xlane.xlu0 %290 }
 0x42f   :  { %v294_v60 = vmul.f32 1.442695, %v292_v58  ;;  %v293_v61 = vsub.f32 %v279_v51, %v291_v59 }
 0x431   :  { %584 = vpow2.f32 %v294_v60  ;;  %v296_v62 = vmul.f32 1.442695, %v293_v61 }
 0x433   :  { %586 = vpow2.f32 %v296_v62 }
 0x43b   :  { %v585_v63 = vpop.eup %584 }
 0x43c   :  { %v298_v2 = vsel %vm285_vm2, %v585_v63, 0.0 }
 0x43d   :  { %v587_v3 = vpop.eup %586  ;;  %299 = vadd.xlane.f32.xlu0 %v298_v2 }
 0x43e   :  { %v301_v4 = vsel %vm285_vm2, %v587_v3, 0.0 }
 0x43f   :  { %302 = vadd.xlane.f32.xlu1 %v301_v4 }
 0x450   :  { %359 = vrot.lane.b32.xlu1 %v186_v42, %s687_s11 }
 0x453   :  { %310 = vrot.lane.b32.xlu0 %v185_v39, %s687_s11  ;;  %s696_s11 = smov [#allocation8]  }
 0x454   :  { %s484_s22 = sshll.u32 %s696_s11, 4  ;;  %s485_s22 = int_to_ptr.vmem [resolvable:$true] %s484_s22 }
 0x455   :  { %s658_s23 = scalar_lea.vmem %s485_s22, 256  ;;  %p663_p11 = scmp.lt.s32.totalorder %s485_s22, %s485_s22 }
 0x456   :  { %p659_p10 = scmp.ne.s32.totalorder %s485_s22, %s658_s23  ;;  %p664_p12 = scmp.lt.s32.totalorder %s658_s23, %s658_s23 }
 0x458   :  { %p665_p13 = por %p664_p12, %p663_p11 }
 0x45a   :  { %p666_p0 = pnand %p665_p13, %p659_p10 }
 0x4ca   :  { %v300_v5 = vpop.xlane.xlu0 %299 }
 0x4cb   :  { %588 = vrcp.f32 %v300_v5 }
 0x4cc   :  { %v303_v6 = vpop.xlane.xlu1 %302 }
 0x4cd   :  { %590 = vrcp.f32 %v303_v6 }
 0x4ce   :  { %v311_v7 = vpop.permute.xlu0 %310 }
 0x4cf   :  { %v317_v8 = vsel %vm315_vm3, %v311_v7, 0 }
 0x4d0   :  { %v360_v9 = vpop.permute.xlu1 %359  ;;  %546 = vmatpush3.bf16.msra.mxu1 %v317_v8 }
 0x4d1   :  { %v365_v10 = vsel %vm315_vm3, %v360_v9, 0  ;;  %557 = vmatprep.subr.bf16.mxu1 %v693_v15 }
 0x4d2   :  { %552 = vmatpush3.bf16.msra.mxu0 %v365_v10 }
 0x4d5   :  { %v589_v11 = vpop.eup %588 }
 0x4d6   :  { %v305_v12 = vmul.f32 %v589_v11, %v585_v63 }
 0x4d7   :  { %v591_v13 = vpop.eup %590 }
 0x4d8   :  { %v307_v16 = vmul.f32 %v591_v13, %v587_v3  ;;  %v308_v17 = vpack.c.bf16 %v305_v12, %v305_v12 }
 0x4da   :  { %548 = vmatmul.mubr.msk.bf16.vlgmr.msra.gmra.mrb[4].mxu1 %vm285_vm2, %v308_v17  ;;  %v309_v18 = vpack.c.bf16 %v307_v16, %v307_v16 }
 0x4db   :  { %558 = vmatpush3.bf16.msra.mxu1 %v578_v14  ;;  %561 = vmatprep.mubr.msk.bf16.mxu1 %vm694_vm1, %v693_v15 }
 0x4dc   :  { %554 = vmatmul.mubr.msk.bf16.vlgmr.msra.gmra.mrb[8].mxu0 %vm285_vm2, %v309_v18  ;;  %559 = vmatprep.subr.bf16.mxu1 %v693_v15 }
 0x4df   :  { %560 = vmatpush3.bf16.msra.mxu1 %v579_v19 }
 0x5ad   :  { %v353_v20 = vpop.f32.mrb[4].mxu1 }
 0x5ae   :  { %v549_v21 = vpop.f32.mrb[5].mxu1 }
 0x5af   :  { %v356_v22 = vpop.f32.mrb[6].mxu1  ;;  %v401_v23 = vpop.f32.mrb[8].mxu0 }
 0x5b0   :  { %v407_v24 = vpack.c.bf16 %v401_v23, %v353_v20  ;;  %v550_v25 = vpop.f32.mrb[7].mxu1  ;;  %v555_v26 = vpop.f32.mrb[9].mxu0 }
 0x5b1   :  { %v404_v27 = vpop.f32.mrb[10].mxu0 }
 0x5b2   :  { %v556_v28 = vpop.f32.mrb[11].mxu0  ;;  %562 = vmatmul.mubr.msk.bf16.vlgmr.msra.gmra.mrb[8].mxu1 %vm71_vm0, %v407_v24 }
 0x685   :  { %v468_v30 = vpop.f32.mrb[8].mxu1 }
 0x686   :  { %v469_v31 = vadd.f32 %v507_v29, %v468_v30  ;;  %v563_v15 = vpop.f32.mrb[9].mxu1 }
 0x687   :  { %v471_v32 = vpop.f32.mrb[10].mxu1 }
 0x688   :  { %v475_v33 = vadd.f32 %v469_v31, %v782_v0  ;;  %v472_v34 = vadd.f32 %v507_v29, %v471_v32  ;;  %v564_v35 = vpop.f32.mrb[11].mxu1 }
 0x68a   :  { %477 = vst.msk [vmem:[#allocation8] sm:$0xff] %vm71_vm0, %v475_v33  ;;  %v476_v36 = vadd.f32 %v472_v34, %v784_v1 }
 0x68c   :  { %478 = vst.msk [vmem:[#allocation8 + $0x8] sm:$0xff] %vm71_vm0, %v476_v36 }
 0x68d   :  { %669 = shalt.err (!%p666_p0)
}
 0x68e   :  { %s670_s26 = scalar_lea.hbm %s866_s7, 256 }
 0x68f   :  { %p671_p1 = scmp.ne.s32.totalorder %s866_s7, %s670_s26  ;;  %p674_p2 = scmp.lt.u32.totalorder %s670_s26, %s866_s7 }
 0x691   :  { %p676_p3 = pnand %p674_p2, %p671_p1 }
 0x693   :  { %679 = shalt.err (!%p676_p3)
}
 0x694   :  { %490 = dma.vmem_to_hbm [thread:$0]  %s485_s22, 256, %s866_s7, [#allocation4], %s690_s1, %s690_s1, %s691_s25  }
 0x695   :  { %684 = dma.done.wait [#allocation4], 256  }
 0x696   :  { %685 = vsyncadd [#allocation4], 4294967040 }
 0x697   :  { %494 = vsyncpa [#allocation3], 1 }
 0x698   :  { %495 = vsyncpa [#allocation6], 1 }
 0x699   :  { %496 = vsyncpa [#allocation4], 1 }

</bundles_post_ra>
